<compile_context>
chip_gen: v6e
topology: v6e:2x2x1
jax: 0.10.0
libtpu: 0.0.40
codegen_flags: <defaults>
</compile_context>

<pallas_src>
import functools

import jax
import jax.numpy as jnp
from jax.experimental import pallas as pl
from jax.experimental.pallas import tpu as pltpu


# ----------------------------- tiling helpers --------------------------------
def _tpu_vmem_bytes():
    try:
        return int(pltpu.get_tpu_info().vmem_capacity_bytes)
    except Exception:
        return 64 << 20                      # conservative (v7x-class) fallback


def _plan_batch_tiling(B, S, F, vmem_bytes):
    """Pick a sublane-aligned batch tile and the padded batch size."""
    small_vmem = vmem_bytes <= (64 << 20)    # v7x-class: 64 MiB per TensorCore
    budget = (12 << 20) if small_vmem else (28 << 20)
    # f32 bytes per batch row resident in VMEM for one grid step:
    # double-buffered input planes + (S,S) one-hot intermediate + outputs.
    per_row = (2 * F * S + S * S + 4 * S) * 4
    cap = max(1, budget // per_row)
    if small_vmem and B >= 16:
        # keep grid >= 2 so the "parallel" batch axis can shard across both TCs
        cap = min(cap, max(8, (B // 2) // 8 * 8))
    if B <= cap:
        return B, B                          # whole batch in a single block
    bt = max(8, (min(cap, B) // 8) * 8)      # sublane-aligned tile within budget
    b_pad = int(pl.cdiv(B, bt)) * bt         # pad the batch: no silent fallback
    return bt, b_pad


# ----------------------------- actor kernel ----------------------------------
def _actor_kernel(n_feat, xt_ref, w_ref, probs_ref):
    # xt_ref: (F, BT, S) lane-dense feature planes, w_ref: (F,) f32 in SMEM.
    # Scoring head on the VPU: logits[b, s] = sum_f w[f] * x[f, b, s]
    logits = w_ref[0] * xt_ref[0]
    for f in range(1, n_feat):
        logits = logits + w_ref[f] * xt_ref[f]

    # softmax over the sequence (lane axis); exact reciprocal (mem-bound kernel,
    # and probs may be used as a distribution / log-probs downstream).
    m = jnp.max(logits, axis=-1, keepdims=True)
    e = jnp.exp(logits - m)
    denom = jnp.sum(e, axis=-1, keepdims=True)
    probs_ref[...] = e / denom


def actor_probs(xt, w_actor, bt, vmem_limit):
    """xt (F, B_pad, S) f32, w_actor (F,) f32 -> probs (B_pad, S)."""
    F, Bp, S = xt.shape
    probs = pl.pallas_call(
        functools.partial(_actor_kernel, F),
        out_shape=jax.ShapeDtypeStruct((Bp, S), jnp.float32),
        grid_spec=pltpu.PrefetchScalarGridSpec(
            num_scalar_prefetch=0,
            grid=(Bp // bt,),
            in_specs=[pl.BlockSpec((F, bt, S), lambda i: (0, i, 0)),
                      pl.BlockSpec(memory_space=pltpu.MemorySpace.SMEM)],
            out_specs=pl.BlockSpec((bt, S), lambda i: (i, 0))),
        compiler_params=pltpu.CompilerParams(
            dimension_semantics=("parallel",),
            vmem_limit_bytes=vmem_limit),
    )(xt, w_actor)
    return probs


# ----------------------------- reward kernel (fused gather) ------------------
def _reward_kernel(n_feat, seq_len, xt_ref, act_ref, r_ref):
    # xt_ref: (F, BT, S) raw city coordinates, act_ref: (BT, S) int32 tour order.
    bt = act_ref.shape[0]
    # one-hot permutation built from broadcasted_iota (VPU compares); the tour
    # gather then happens in-register -- no gathered (B,S,F) HBM round trip.
    iota_j = jax.lax.broadcasted_iota(jnp.int32, (bt, seq_len, seq_len), 2)
    onehot = (act_ref[...][:, :, None] == iota_j).astype(jnp.float32)  # (BT,S_i,S_j)

    sumsq = None
    for f in range(n_feat):
        xf = xt_ref[f]                                       # (BT, S) lane-dense
        # gather: coordinate of the i-th visited city (lane-axis reduce / XLU).
        # TODO(synk): for large S this one-hot contraction could be fed to the
        # otherwise-idle MXU as a batched matmul instead of the VPU sum.
        gf = jnp.sum(onehot * xf[:, None, :], axis=-1)       # (BT, S)
        # leg vector: current city minus next city (XLU lane rotation).
        d = gf - pltpu.roll(gf, shift=seq_len - 1, axis=1)
        sumsq = d * d if sumsq is None else sumsq + d * d

    r_ref[...] = jnp.sum(jnp.sqrt(sumsq), axis=-1, keepdims=True)   # (BT, 1)


def tour_reward(xt, actions, bt, vmem_limit):
    """xt (F, B_pad, S) f32, actions (B_pad, S) int32 -> closed tour length (B_pad,)."""
    F, Bp, S = xt.shape
    r = pl.pallas_call(
        functools.partial(_reward_kernel, F, S),
        out_shape=jax.ShapeDtypeStruct((Bp, 1), jnp.float32),
        grid_spec=pltpu.PrefetchScalarGridSpec(
            num_scalar_prefetch=0,
            grid=(Bp // bt,),
            in_specs=[pl.BlockSpec((F, bt, S), lambda i: (0, i, 0)),
                      pl.BlockSpec((bt, S), lambda i: (i, 0))],
            out_specs=pl.BlockSpec((bt, 1), lambda i: (i, 0))),
        compiler_params=pltpu.CompilerParams(
            dimension_semantics=("parallel",),
            vmem_limit_bytes=vmem_limit),
    )(xt, actions)
    return r[:, 0]


# ----------------------------- forward (module) -------------------------------
def solver_partial_forward(inputs, w_actor):
    """Mirrors Solver_Partial.forward: returns (R, probs, actions)."""
    B, S, F = inputs.shape
    vmem_bytes = _tpu_vmem_bytes()
    bt, b_pad = _plan_batch_tiling(B, S, F, vmem_bytes)
    vmem_limit = min(vmem_bytes // 2, 64 << 20)   # 64 MiB on 128 MiB chips, 32 MiB on v7x

    # ONE transpose to (F, B, S), shared by both kernels: single contiguous DMA
    # stream per kernel, S on the lane axis everywhere.
    xt = jnp.transpose(inputs, (2, 0, 1))
    if b_pad != B:
        xt = jnp.pad(xt, ((0, 0), (0, b_pad - B), (0, 0)))

    # TODO(synk): the reference `self.actor` (pointer network) is undefined in
    # the snippet; a deterministic linear-scoring policy stands in for it, and
    # the argsort (action ordering) stays in plain JAX (no Pallas sort on TPU).
    probs = actor_probs(xt, w_actor, bt, vmem_limit)[:B]          # (B, S)
    # softmax is strictly monotone per row -> argsort(-probs) == argsort(-logits)
    # (exp underflow could tie extreme logits; acceptable for this policy).
    actions = jnp.argsort(-probs, axis=-1).astype(jnp.int32)      # (B, S)

    act_p = jnp.pad(actions, ((0, b_pad - B), (0, 0))) if b_pad != B else actions
    # == torch: reward(inputs.gather(1, actions.unsqueeze(2).repeat(1,1,F))),
    # with the gather fused into the Pallas reward kernel.
    R = tour_reward(xt, act_p, bt, vmem_limit)[:B]                # (B,)
    return R, probs, actions


# ----------------------------- reference (plain JAX) --------------------------
def _reference_reward(inputs, actions):
    g = jnp.take_along_axis(inputs, actions[:, :, None], axis=1)  # broadcast idx
    nxt = jnp.roll(g, shift=-1, axis=1)
    return jnp.sum(jnp.sqrt(jnp.sum((g - nxt) ** 2, axis=-1)), axis=-1)


if __name__ == "__main__":
    key = jax.random.PRNGKey(0)
    B, S, F = 2, 8, 2                       # batch x seq_len x feature (2-D coords)
    inputs = jax.random.uniform(key, (B, S, F), dtype=jnp.float32)
    w_actor = (jnp.arange(F, dtype=jnp.float32) + 1.0) * 0.1      # (F,) scoring head

    R, probs, actions = solver_partial_forward(inputs, w_actor)
    jax.block_until_ready((R, probs, actions))

    # correctness checks against plain-JAX references
    logits_ref = jnp.einsum('bsf,f->bs', inputs, w_actor)
    probs_ref = jax.nn.softmax(logits_ref, axis=-1)
    R_ref = _reference_reward(inputs, actions)

    assert R.shape == (B,) and probs.shape == (B, S) and actions.shape == (B, S)
    assert jnp.allclose(probs, probs_ref, rtol=1e-5, atol=1e-6), (probs, probs_ref)
    assert jnp.allclose(jnp.sum(probs, axis=-1), 1.0, atol=1e-5)
    assert jnp.allclose(R, R_ref, rtol=1e-5, atol=1e-5), (R, R_ref)
    # each row of actions must be a permutation of [0, S)
    assert jnp.all(jnp.sort(actions, axis=-1) == jnp.arange(S, dtype=jnp.int32)[None, :])

    print("KERNEL_OK")
</pallas_src>

<mosaic_0001>
module attributes {stable_mosaic.version = 11 : i64} {
  func.func @_actor_kernel(%arg0: i32, %arg1: memref<2x2x8xf32, #tpu.memory_space<vmem>>, %arg2: memref<2xf32, #tpu.memory_space<smem>>, %arg3: memref<2x8xf32, #tpu.memory_space<vmem>>) attributes {dimension_semantics = [#tpu.dimension_semantics<parallel>], iteration_bounds = array<i64: 1>, scalar_prefetch = 0 : i64, scratch_operands = 0 : i64, tpu.core_type = #tpu.core_type<tc>, window_params = [{transform_indices = @transform_0, window_bounds = array<i64: 2, 2, 8>}, {transform_indices = @transform_1, window_bounds = array<i64: 2>}, {transform_indices = @transform_2, window_bounds = array<i64: 2, 8>}]} {
    %c0 = arith.constant 0 : index
    %0 = memref.load %arg2[%c0] : memref<2xf32, #tpu.memory_space<smem>>
    %c0_0 = arith.constant 0 : index
    %c0_1 = arith.constant 0 : index
    %c0_2 = arith.constant 0 : index
    %1 = vector.load %arg1[%c0_0, %c0_1, %c0_2] : memref<2x2x8xf32, #tpu.memory_space<vmem>>, vector<1x2x8xf32>
    %2 = vector.shape_cast %1 : vector<1x2x8xf32> to vector<2x8xf32>
    %3 = vector.broadcast %0 : f32 to vector<2x8xf32>
    %4 = arith.mulf %3, %2 : vector<2x8xf32>
    %c1 = arith.constant 1 : index
    %5 = memref.load %arg2[%c1] : memref<2xf32, #tpu.memory_space<smem>>
    %c1_3 = arith.constant 1 : index
    %c0_4 = arith.constant 0 : index
    %c0_5 = arith.constant 0 : index
    %6 = vector.load %arg1[%c1_3, %c0_4, %c0_5] : memref<2x2x8xf32, #tpu.memory_space<vmem>>, vector<1x2x8xf32>
    %7 = vector.shape_cast %6 : vector<1x2x8xf32> to vector<2x8xf32>
    %8 = vector.broadcast %5 : f32 to vector<2x8xf32>
    %9 = arith.mulf %8, %7 : vector<2x8xf32>
    %10 = arith.addf %4, %9 : vector<2x8xf32>
    %cst = arith.constant dense<0xFF800000> : vector<2xf32>
    %11 = vector.multi_reduction <maximumf>, %10, %cst [1] : vector<2x8xf32> to vector<2xf32>
    %12 = vector.shape_cast %11 : vector<2xf32> to vector<2x1xf32>
    %13 = vector.broadcast %12 : vector<2x1xf32> to vector<2x8xf32>
    %14 = arith.subf %10, %13 : vector<2x8xf32>
    %15 = math.exp %14 : vector<2x8xf32>
    %cst_6 = arith.constant dense<0.000000e+00> : vector<2xf32>
    %16 = vector.multi_reduction <add>, %15, %cst_6 [1] : vector<2x8xf32> to vector<2xf32>
    %17 = vector.shape_cast %16 : vector<2xf32> to vector<2x1xf32>
    %18 = vector.broadcast %17 : vector<2x1xf32> to vector<2x8xf32>
    %19 = arith.divf %15, %18 : vector<2x8xf32>
    %c0_7 = arith.constant 0 : index
    %c0_8 = arith.constant 0 : index
    %20 = vector.load %arg3[%c0_7, %c0_8] : memref<2x8xf32, #tpu.memory_space<vmem>>, vector<2x8xf32>
    tpu.vector_store %arg3[%c0_7, %c0_8], %19 {strides = array<i32>} : memref<2x8xf32, #tpu.memory_space<vmem>>, vector<2x8xf32>,
    return
  }
  func.func @transform_0(%arg0: i32) -> (i32, i32, i32) {
    %c0_i32 = arith.constant 0 : i32
    %c0_i32_0 = arith.constant 0 : i32
    %c0_i32_1 = arith.constant 0 : i32
    return %c0_i32, %arg0, %c0_i32_0 : i32, i32, i32
  }
  func.func @transform_1(%arg0: i32) -> i32 {
    %c0_i32 = arith.constant 0 : i32
    %c0_i32_0 = arith.constant 0 : i32
    return %c0_i32 : i32
  }
  func.func @transform_2(%arg0: i32) -> (i32, i32) {
    %c0_i32 = arith.constant 0 : i32
    %c0_i32_0 = arith.constant 0 : i32
    return %arg0, %c0_i32 : i32, i32
  }
}

</mosaic_0001>

<bundles_post_ra>
// kernel: tpu_custom_call.1
= control target key start
LH: loop header
LB: loop body
LE: loop exit
PB: predicated region body
PF: predicated region fallthrough
CT: control target
= control target key end

     0   :  { %7 = vsyncpa [#allocation3], 0  ;;  %s178_s0 = inlined_call_operand.hbm [shape: f32[2,2,8], index: 0, kind: input, shape index: {}]   ;;  %s179_s1 = inlined_call_operand.vmem [shape: f32[2], index: 1, kind: input, shape index: {}]   ;;  %s180_s2 = inlined_call_operand.hbm [shape: f32[2,8], index: 2, kind: output, shape index: {}]  }
   0x1   :  { %8 = vsyncpa [#allocation5], 0 }
   0x2   :  { %9 = vsyncpa [#allocation4], 0  ;;  %s146_s9 = smov [#allocation2]   ;;  %s28_s13 = sshll.u32 %s179_s1, 4  ;;  %s29_s13 = int_to_ptr.vmem [resolvable:$true] %s28_s13 }
   0x3   :  { %s15_s10 = sshll.u32 %s146_s9, 4  ;;  %s16_s10 = int_to_ptr.vmem [resolvable:$true] %s15_s10 }
   0x4   :  { %s96_s14 = scalar_lea.vmem %s16_s10, 64  ;;  %p101_p1 = scmp.lt.s32.totalorder %s16_s10, %s16_s10 }
   0x5   :  { %p97_p0 = scmp.ne.s32.totalorder %s16_s10, %s96_s14  ;;  %p102_p2 = scmp.lt.s32.totalorder %s96_s14, %s96_s14 }
   0x7   :  { %p103_p3 = por %p102_p2, %p101_p1 }
   0x9   :  { %p104_p4 = pnand %p103_p3, %p97_p0 }
   0xb   :  { %107 = shalt.err (!%p104_p4)
}
   0xc   :  { %s147_s15 = smov 32   ;;  %s148_s16 = smov 2  }
   0xd   :  { %21 = dma.hbm_to_vmem [thread:$0]  %s178_s0, 64, %s16_s10, [#allocation3], %s147_s15, %s147_s15, %s148_s16  }
   0xe   :  { %s108_s19 = scalar_lea.vmem %s29_s13, 16  ;;  %p113_p6 = scmp.lt.s32.totalorder %s29_s13, %s29_s13 }
   0xf   :  { %p109_p5 = scmp.ne.s32.totalorder %s29_s13, %s108_s19  ;;  %p114_p7 = scmp.lt.s32.totalorder %s108_s19, %s108_s19 }
  0x11   :  { %p115_p8 = por %p114_p7, %p113_p6 }
  0x13   :  { %p116_p9 = pnand %p115_p8, %p109_p5 }
  0x15   :  { %119 = shalt.err (!%p116_p9)
}
  0x16   :  { %s149_s1 = smov [#allocation6]  }
  0x17   :  { %31 = dma.vmem_to_smem %s29_s13, 16, %s149_s1, [#allocation5]  }
  0x18   :  { %140 = dma.done.wait [#allocation3], 64  }
  0x19   :  { %141 = vsyncadd [#allocation3], 4294967232 }
  0x1a   :  { %142 = dma.done.wait [#allocation5], 16  }
  0x1b   :  { %143 = vsyncadd [#allocation5], 4294967280 }
  0x1c   :  { %38 = sfence }
  0x1d   :  { %s39_s20 = sld [smem:[#allocation6]]  ;;  %v40_v0 = vld [vmem:[#allocation2] sm:$0x3]  ;;  %v45_v1 = vld [vmem:[#allocation2 + $0x2] sm:$0x3]  ;;  %vm49_vm0 = vcmask 58368  }
  0x1e   :  { %s78_s21 = sld [smem:[#allocation6 + $0x1]]  ;;  %s150_s0 = smov [#allocation7]  }
  0x1f   :  { %s68_s22 = sshll.u32 %s150_s0, 4  ;;  %s69_s22 = int_to_ptr.vmem [resolvable:$true] %s68_s22 }
  0x20   :  { %s120_s23 = scalar_lea.vmem %s69_s22, 32  ;;  %p125_p11 = scmp.lt.s32.totalorder %s69_s22, %s69_s22 }
  0x21   :  { %p121_p10 = scmp.ne.s32.totalorder %s69_s22, %s120_s23  ;;  %p126_p12 = scmp.lt.s32.totalorder %s120_s23, %s120_s23 }
  0x23   :  { %v41_v2 = vstv %s39_s20  ;;  %p127_p13 = por %p126_p12, %p125_p11 }
  0x24   :  { %v42_v3 = vmul.f32 %v41_v2, %v40_v0  ;;  %v46_v4 = vstv %s78_s21 }
  0x25   :  { %v47_v5 = vmul.f32 %v46_v4, %v45_v1  ;;  %p128_p0 = pnand %p127_p13, %p121_p10 }
  0x27   :  { %v48_v6 = vadd.f32 %v47_v5, %v42_v3 }
  0x29   :  { %v50_v7 = vsel %vm49_vm0, %v48_v6, -inf }
  0x2a   :  { %51 = vmax.xlane.f32.xlu0 %v50_v7 }
  0xb3   :  { %v52_v8 = vpop.xlane.xlu0 %51 }
  0xb4   :  { %v53_v9 = vsub.f32 %v48_v6, %v52_v8 }
  0xb6   :  { %v54_v10 = vmul.f32 1.442695, %v53_v9 }
  0xb8   :  { %84 = vpow2.f32 %v54_v10 }
  0xc5   :  { %v85_v11 = vpop.eup %84 }
  0xc6   :  { %v56_v12 = vsel %vm49_vm0, %v85_v11, 0.0 }
  0xc7   :  { %57 = vadd.xlane.f32.xlu0 %v56_v12 }
 0x150   :  { %v58_v13 = vpop.xlane.xlu0 %57 }
 0x151   :  { %86 = vrcp.f32 %v58_v13 }
 0x15e   :  { %v87_v14 = vpop.eup %86 }
 0x15f   :  { %v60_v15 = vmul.f32 %v87_v14, %v85_v11 }
 0x161   :  { %61 = vst.msk [vmem:[#allocation7] sm:$0x3] %vm49_vm0, %v60_v15 }
 0x162   :  { %131 = shalt.err (!%p128_p0)
}
 0x163   :  { %71 = dma.vmem_to_hbm [thread:$0]  %s69_s22, 32, %s180_s2, [#allocation4]  }
 0x164   :  { %144 = dma.done.wait [#allocation4], 32  }
 0x165   :  { %145 = vsyncadd [#allocation4], 4294967264 }
 0x166   :  { %75 = vsyncpa [#allocation3], 1 }
 0x167   :  { %76 = vsyncpa [#allocation4], 1 }
 0x168   :  { %77 = vsyncpa [#allocation5], 1 }

</bundles_post_ra>
